<compile_context>
chip_gen: v7x
topology: tpu7x:2x2x1
jax: 0.10.0
libtpu: 0.0.40
codegen_flags: <defaults>
</compile_context>

<pallas_src>
import functools

import jax
import jax.numpy as jnp
from jax import lax
from jax.experimental import pallas as pl
from jax.experimental.pallas import tpu as pltpu

_LANE = 128
_SUBLANE = 8
# 32-row strips stay sublane-aligned for every input packing (f32/bf16/int8).
_GROUP_ROWS = 32
# 4096 rows * 128 lanes * 4 B = 2 MiB per f32 input block; 3 inputs x 2
# pipeline buffers = 12 MiB of VMEM -> fits v5e/v6e/v7x (with the explicit
# vmem_limit below) while amortizing per-grid-step overhead.
_MAX_TILE_ROWS = 4096


def _boundary_loss_kernel(pred_ref, target_ref, dist_ref, out_ref, *,
                          tile_rows, n_chunks, chunks_per_split, has_oob,
                          needs_mask, valid_rows, tail_lanes, unroll):
    c = pl.program_id(0)                       # core-split index
    r = pl.program_id(2)                       # row-chunk index within split
    g = c * chunks_per_split + r               # global row-chunk index

    @pl.when(r == 0)
    def _init():
        out_ref[...] = jnp.zeros_like(out_ref)

    n_groups = tile_rows // _GROUP_ROWS

    def accumulate_chunk(masked):
        def _chunk():
            def group(i, carry):
                start = pl.multiple_of(i * _GROUP_ROWS, _GROUP_ROWS)
                sl = pl.ds(start, _GROUP_ROWS)
                # Native-dtype strip loads -> f32 in vregs (no full-tile temps).
                p = jax.nn.sigmoid(pred_ref[0, sl, :].astype(jnp.float32))
                t = target_ref[0, sl, :].astype(jnp.float32)
                d = dist_ref[0, sl, :].astype(jnp.float32)
                if masked:
                    grow = (g * tile_rows + start
                            + lax.broadcasted_iota(
                                jnp.int32, (_GROUP_ROWS, _LANE), 0))
                    if tail_lanes:
                        lane = lax.broadcasted_iota(
                            jnp.int32, (_GROUP_ROWS, _LANE), 1)
                        valid = jnp.logical_or(
                            grow < valid_rows - 1,
                            jnp.logical_and(grow == valid_rows - 1,
                                            lane < tail_lanes))
                    else:
                        valid = grow < valid_rows
                    # Select (not multiply): edge-block garbage may be NaN/Inf.
                    p = jnp.where(valid, p, 0.0)
                    t = jnp.where(valid, t, 0.0)
                    d = jnp.where(valid, d, 0.0)
                pt = p * t                      # pred * target
                ptd = pt * d                    # pred * target * dist_maps

                def fold(x):   # (GROUP_ROWS,128) -> (8,128) with pure VPU adds
                    return jnp.sum(
                        x.reshape(_GROUP_ROWS // _SUBLANE, _SUBLANE, _LANE),
                        axis=0)

                out_ref[0, 0, 0:8, :] += fold(p)
                out_ref[0, 0, 8:16, :] += fold(t)
                out_ref[0, 0, 16:24, :] += fold(d)
                out_ref[0, 0, 24:32, :] += fold(pt)
                out_ref[0, 0, 32:40, :] += fold(ptd)
                return carry

            lax.fori_loop(0, n_groups, group, 0, unroll=unroll)
        return _chunk

    def _compute():
        if not needs_mask:
            accumulate_chunk(False)()
        elif n_chunks == 1:
            accumulate_chunk(True)()
        else:
            # Only the single global edge chunk pays the mask cost.
            is_edge = g == n_chunks - 1
            pl.when(is_edge)(accumulate_chunk(True))
            pl.when(jnp.logical_not(is_edge))(accumulate_chunk(False))

    if has_oob:
        # Uneven core split: clamped duplicate chunks contribute nothing.
        pl.when(g < n_chunks)(_compute)
    else:
        _compute()


def boundary_loss(pred, target, dist_maps, *, max_tile_rows=_MAX_TILE_ROWS):
    """Pallas implementation of BoundaryLoss.forward.

    pred, target, dist_maps: (B, C, H, W) arrays in any float/int dtype
    (target is cast to float in-kernel, like `target.float()`).
    Returns (1 - dice, 1 - boundary_dice), each of shape (B,), float32.
    """
    assert pred.shape == target.shape == dist_maps.shape
    B = pred.shape[0]
    N = 1
    for dim in pred.shape[1:]:
        N *= int(dim)

    valid_rows = pl.cdiv(N, _LANE)             # rows holding real data
    tail_lanes = N % _LANE                     # 0 => last valid row is full
    rows_arr = max(valid_rows, _GROUP_ROWS)    # array rows after (tiny) pad

    max_tile_rows = max(_GROUP_ROWS,
                        (int(max_tile_rows) // _GROUP_ROWS) * _GROUP_ROWS)
    if rows_arr >= max_tile_rows:
        tile_rows = max_tile_rows
    else:
        tile_rows = max(_GROUP_ROWS, (rows_arr // _GROUP_ROWS) * _GROUP_ROWS)
    n_chunks = pl.cdiv(rows_arr, tile_rows)
    assert rows_arr + tile_rows < (1 << 31)    # in-kernel row indices are int32

    # Split the row-chunk range across a leading "parallel" grid axis so both
    # v7x TensorCores are used even when B == 1 (no effect on v5e/v6e).
    n_splits = 2 if n_chunks >= 2 else 1
    chunks_per_split = pl.cdiv(n_chunks, n_splits)
    has_oob = n_splits * chunks_per_split > n_chunks

    needs_mask = (rows_arr * _LANE != N) or (rows_arr % tile_rows != 0)

    n_groups = tile_rows // _GROUP_ROWS
    if n_groups % 4 == 0:
        unroll = 4
    elif n_groups % 2 == 0:
        unroll = 2
    else:
        unroll = 1

    def _to_lanes(x):
        x = x.reshape(B, N)                    # reshape-only view, no cast
        pad = rows_arr * _LANE - N
        if pad:                                # rare: lane tail / tiny input
            x = jnp.pad(x, ((0, 0), (0, pad)))
        return x.reshape(B, rows_arr, _LANE)

    pred_l = _to_lanes(pred)
    target_l = _to_lanes(target)
    dist_l = _to_lanes(dist_maps)

    if has_oob:
        def chunk_idx(c_idx, r_idx):
            return jnp.minimum(c_idx * chunks_per_split + r_idx, n_chunks - 1)
    else:
        def chunk_idx(c_idx, r_idx):
            return c_idx * chunks_per_split + r_idx

    in_spec = pl.BlockSpec((1, tile_rows, _LANE),
                           lambda c, b, r: (b, chunk_idx(c, r), 0))
    # Five (8,128) partial accumulators per (split, batch); written lane-dense,
    # block index constant across the reduction axis -> resident accumulator.
    out_spec = pl.BlockSpec((1, 1, 5 * _SUBLANE, _LANE),
                            lambda c, b, r: (c, b, 0, 0))

    kernel = functools.partial(
        _boundary_loss_kernel,
        tile_rows=tile_rows, n_chunks=n_chunks,
        chunks_per_split=chunks_per_split, has_oob=has_oob,
        needs_mask=needs_mask, valid_rows=valid_rows, tail_lanes=tail_lanes,
        unroll=unroll)

    # 3 inputs x 2 pipeline buffers x native-dtype block bytes + headroom.
    block_bytes = sum(2 * tile_rows * _LANE * x.dtype.itemsize
                      for x in (pred_l, target_l, dist_l))
    vmem_limit = int(min(max(block_bytes + (4 << 20), 16 << 20), 56 << 20))

    out = pl.pallas_call(
        kernel,
        out_shape=jax.ShapeDtypeStruct(
            (n_splits, B, 5 * _SUBLANE, _LANE), jnp.float32),
        grid=(n_splits, B, chunks_per_split),
        in_specs=[in_spec, in_spec, in_spec],
        out_specs=out_spec,
        compiler_params=pltpu.CompilerParams(
            dimension_semantics=("parallel", "parallel", "arbitrary"),
            vmem_limit_bytes=vmem_limit),
    )(pred_l, target_l, dist_l)

    # Combine per-(split, batch) partials and do the dice arithmetic in XLA.
    parts = out.reshape(n_splits, B, 5, _SUBLANE, _LANE).sum(axis=(0, 3, 4))
    sum_pred, sum_target, sum_dist = parts[:, 0], parts[:, 1], parts[:, 2]
    intersection, boundary_intersection = parts[:, 3], parts[:, 4]

    union = sum_pred + sum_target - intersection
    boundary_union = sum_pred + sum_dist - boundary_intersection
    dice = (2.0 * intersection + 1.0) / (union + 1.0)
    boundary_dice = (2.0 * boundary_intersection + 1.0) / (boundary_union + 1.0)
    return 1.0 - dice, 1.0 - boundary_dice


def _reference(pred, target, dist_maps):
    pred = jax.nn.sigmoid(pred.astype(jnp.float32))
    target = target.astype(jnp.float32)
    dist_maps = dist_maps.astype(jnp.float32)
    intersection = (pred * target).sum(axis=(1, 2, 3))
    boundary_intersection = (pred * target * dist_maps).sum(axis=(1, 2, 3))
    union = pred.sum(axis=(1, 2, 3)) + target.sum(axis=(1, 2, 3)) - intersection
    boundary_union = (pred.sum(axis=(1, 2, 3)) + dist_maps.sum(axis=(1, 2, 3))
                      - boundary_intersection)
    dice = (2 * intersection + 1) / (union + 1)
    boundary_dice = (2 * boundary_intersection + 1) / (boundary_union + 1)
    return 1 - dice, 1 - boundary_dice


if __name__ == "__main__":
    key = jax.random.PRNGKey(0)
    ks = jax.random.split(key, 12)

    def check(pred, target, dist, **kw):
        d, bd = boundary_loss(pred, target, dist, **kw)
        jax.block_until_ready((d, bd))
        rd, rbd = _reference(pred, target, dist)
        assert jnp.allclose(d, rd, atol=1e-5, rtol=1e-5), (d, rd)
        assert jnp.allclose(bd, rbd, atol=1e-5, rtol=1e-5), (bd, rbd)

    # Test 1: canonical small shape, f32, single chunk (rows padded to one
    # 32-row group; zero-pad rows masked so sigmoid(0) does not leak in).
    B, C, H, W = 2, 4, 16, 16
    pred = jax.random.normal(ks[0], (B, C, H, W), dtype=jnp.float32)
    target = (jax.random.uniform(ks[1], (B, C, H, W)) > 0.5).astype(jnp.float32)
    dist = jax.random.uniform(ks[2], (B, C, H, W), dtype=jnp.float32) * 2.0
    check(pred, target, dist)

    # Test 2: multi-chunk reduction + two-core split + bf16 pred (native DMA).
    shape2 = (2, 4, 64, 32)                       # rows = 64 -> 2 chunks of 32
    pred2 = jax.random.normal(ks[3], shape2, dtype=jnp.bfloat16)
    target2 = (jax.random.uniform(ks[4], shape2) > 0.5).astype(jnp.float32)
    dist2 = jax.random.uniform(ks[5], shape2, dtype=jnp.float32) * 2.0
    check(pred2, target2, dist2, max_tile_rows=32)

    # Test 3: odd chunk count -> clamped/skipped OOB chunk on the second split
    # plus a partial (row-masked) edge chunk.
    shape3 = (1, 4, 88, 32)                       # rows = 88 -> 3 chunks of 32
    pred3 = jax.random.normal(ks[6], shape3, dtype=jnp.float32)
    target3 = (jax.random.uniform(ks[7], shape3) > 0.5).astype(jnp.float32)
    dist3 = jax.random.uniform(ks[8], shape3, dtype=jnp.float32) * 2.0
    check(pred3, target3, dist3, max_tile_rows=32)

    # Test 4: ragged lane tail (numel % 128 != 0) on a tiny volume.
    shape4 = (1, 3, 10, 10)                       # numel = 300
    pred4 = jax.random.normal(ks[9], shape4, dtype=jnp.float32)
    target4 = (jax.random.uniform(ks[10], shape4) > 0.5).astype(jnp.float32)
    dist4 = jax.random.uniform(ks[11], shape4, dtype=jnp.float32) * 2.0
    check(pred4, target4, dist4)

    print("KERNEL_OK")
</pallas_src>

<mosaic_0001>
module attributes {stable_mosaic.version = 11 : i64} {
  func.func @_boundary_loss_kernel(%arg0: i32, %arg1: i32, %arg2: i32, %arg3: memref<1x32x128xf32, #tpu.memory_space<vmem>>, %arg4: memref<1x32x128xf32, #tpu.memory_space<vmem>>, %arg5: memref<1x32x128xf32, #tpu.memory_space<vmem>>, %arg6: memref<1x1x40x128xf32, #tpu.memory_space<vmem>>) attributes {dimension_semantics = [#tpu.dimension_semantics<parallel>, #tpu.dimension_semantics<parallel>, #tpu.dimension_semantics<arbitrary>], iteration_bounds = array<i64: 1, 2, 1>, scalar_prefetch = 0 : i64, scratch_operands = 0 : i64, tpu.core_type = #tpu.core_type<tc>, window_params = [{transform_indices = @transform_0, window_bounds = array<i64: 1, 32, 128>}, {transform_indices = @transform_1, window_bounds = array<i64: 1, 32, 128>}, {transform_indices = @transform_2, window_bounds = array<i64: 1, 32, 128>}, {transform_indices = @transform_3, window_bounds = array<i64: 1, 1, 40, 128>}]} {
    %c1_i32 = arith.constant 1 : i32
    %0 = arith.muli %arg0, %c1_i32 : i32
    %1 = arith.addi %0, %arg2 : i32
    %c0_i32 = arith.constant 0 : i32
    %2 = arith.cmpi eq, %arg2, %c0_i32 : i32
    %3 = arith.extui %2 : i1 to i32
    %c0_i32_0 = arith.constant 0 : i32
    %4 = arith.cmpi ne, %3, %c0_i32_0 : i32
    scf.if %4 {
      %cst_53 = arith.constant 0.000000e+00 : f32
      %76 = vector.broadcast %cst_53 : f32 to vector<1x1x40x128xf32>
      %c0_54 = arith.constant 0 : index
      %c0_55 = arith.constant 0 : index
      %c0_56 = arith.constant 0 : index
      %c0_57 = arith.constant 0 : index
      %77 = vector.load %arg6[%c0_54, %c0_55, %c0_56, %c0_57] : memref<1x1x40x128xf32, #tpu.memory_space<vmem>>, vector<1x1x40x128xf32>
      tpu.vector_store %arg6[%c0_54, %c0_55, %c0_56, %c0_57], %76 {strides = array<i32>} : memref<1x1x40x128xf32, #tpu.memory_space<vmem>>, vector<1x1x40x128xf32>,
    } else {
    }
    %c0_i32_1 = arith.constant 0 : i32
    %c32_i32 = arith.constant 32 : i32
    %5 = arith.muli %c0_i32_1, %c32_i32 : i32
    %6 = tpu.assume_multiple %5, 32 : i32
    %c0 = arith.constant 0 : index
    %7 = arith.index_cast %6 : i32 to index
    %c0_2 = arith.constant 0 : index
    %8 = vector.load %arg3[%c0, %7, %c0_2] : memref<1x32x128xf32, #tpu.memory_space<vmem>>, vector<1x32x128xf32>
    %9 = vector.shape_cast %8 : vector<1x32x128xf32> to vector<32x128xf32>
    %10 = arith.negf %9 : vector<32x128xf32>
    %11 = math.exp %10 : vector<32x128xf32>
    %cst = arith.constant 1.000000e+00 : f32
    %12 = vector.broadcast %cst : f32 to vector<32x128xf32>
    %13 = arith.addf %12, %11 : vector<32x128xf32>
    %14 = arith.divf %12, %13 : vector<32x128xf32>
    %c0_3 = arith.constant 0 : index
    %15 = arith.index_cast %6 : i32 to index
    %c0_4 = arith.constant 0 : index
    %16 = vector.load %arg4[%c0_3, %15, %c0_4] : memref<1x32x128xf32, #tpu.memory_space<vmem>>, vector<1x32x128xf32>
    %17 = vector.shape_cast %16 : vector<1x32x128xf32> to vector<32x128xf32>
    %c0_5 = arith.constant 0 : index
    %18 = arith.index_cast %6 : i32 to index
    %c0_6 = arith.constant 0 : index
    %19 = vector.load %arg5[%c0_5, %18, %c0_6] : memref<1x32x128xf32, #tpu.memory_space<vmem>>, vector<1x32x128xf32>
    %20 = vector.shape_cast %19 : vector<1x32x128xf32> to vector<32x128xf32>
    %c32_i32_7 = arith.constant 32 : i32
    %21 = arith.muli %1, %c32_i32_7 : i32
    %22 = arith.addi %21, %6 : i32
    %23 = tpu.iota {dimensions = array<i32: 0>} : vector<32x128xi32>
    %24 = vector.broadcast %22 : i32 to vector<32x128xi32>
    %25 = arith.addi %24, %23 : vector<32x128xi32>
    %c8_i32 = arith.constant 8 : i32
    %26 = vector.broadcast %c8_i32 : i32 to vector<32x128xi32>
    %27 = arith.cmpi slt, %25, %26 : vector<32x128xi32>
    %cst_8 = arith.constant 0.000000e+00 : f32
    %28 = vector.broadcast %cst_8 : f32 to vector<32x128xf32>
    %29 = arith.select %27, %14, %28 : vector<32x128xi1>, vector<32x128xf32>
    %cst_9 = arith.constant 0.000000e+00 : f32
    %30 = vector.broadcast %cst_9 : f32 to vector<32x128xf32>
    %31 = arith.select %27, %17, %30 : vector<32x128xi1>, vector<32x128xf32>
    %cst_10 = arith.constant 0.000000e+00 : f32
    %32 = vector.broadcast %cst_10 : f32 to vector<32x128xf32>
    %33 = arith.select %27, %20, %32 : vector<32x128xi1>, vector<32x128xf32>
    %34 = arith.mulf %29, %31 : vector<32x128xf32>
    %35 = arith.mulf %34, %33 : vector<32x128xf32>
    %c0_11 = arith.constant 0 : index
    %c0_12 = arith.constant 0 : index
    %c0_13 = arith.constant 0 : index
    %c0_14 = arith.constant 0 : index
    %36 = vector.load %arg6[%c0_11, %c0_12, %c0_13, %c0_14] : memref<1x1x40x128xf32, #tpu.memory_space<vmem>>, vector<1x1x8x128xf32>
    %37 = vector.shape_cast %36 : vector<1x1x8x128xf32> to vector<8x128xf32>
    %38 = vector.shape_cast %29 : vector<32x128xf32> to vector<4x8x128xf32>
    %cst_15 = arith.constant dense<0.000000e+00> : vector<8x128xf32>
    %39 = vector.multi_reduction <add>, %38, %cst_15 [0] : vector<4x8x128xf32> to vector<8x128xf32>
    %40 = arith.addf %37, %39 : vector<8x128xf32>
    %c0_16 = arith.constant 0 : index
    %c0_17 = arith.constant 0 : index
    %c0_18 = arith.constant 0 : index
    %c0_19 = arith.constant 0 : index
    %41 = vector.load %arg6[%c0_16, %c0_17, %c0_18, %c0_19] : memref<1x1x40x128xf32, #tpu.memory_space<vmem>>, vector<1x1x8x128xf32>
    %42 = vector.shape_cast %41 : vector<1x1x8x128xf32> to vector<8x128xf32>
    %43 = vector.shape_cast %40 : vector<8x128xf32> to vector<1x1x8x128xf32>
    tpu.vector_store %arg6[%c0_16, %c0_17, %c0_18, %c0_19], %43 {strides = array<i32>} : memref<1x1x40x128xf32, #tpu.memory_space<vmem>>, vector<1x1x8x128xf32>,
    %c0_20 = arith.constant 0 : index
    %c0_21 = arith.constant 0 : index
    %c8 = arith.constant 8 : index
    %c0_22 = arith.constant 0 : index
    %44 = vector.load %arg6[%c0_20, %c0_21, %c8, %c0_22] : memref<1x1x40x128xf32, #tpu.memory_space<vmem>>, vector<1x1x8x128xf32>
    %45 = vector.shape_cast %44 : vector<1x1x8x128xf32> to vector<8x128xf32>
    %46 = vector.shape_cast %31 : vector<32x128xf32> to vector<4x8x128xf32>
    %cst_23 = arith.constant dense<0.000000e+00> : vector<8x128xf32>
    %47 = vector.multi_reduction <add>, %46, %cst_23 [0] : vector<4x8x128xf32> to vector<8x128xf32>
    %48 = arith.addf %45, %47 : vector<8x128xf32>
    %c0_24 = arith.constant 0 : index
    %c0_25 = arith.constant 0 : index
    %c8_26 = arith.constant 8 : index
    %c0_27 = arith.constant 0 : index
    %49 = vector.load %arg6[%c0_24, %c0_25, %c8_26, %c0_27] : memref<1x1x40x128xf32, #tpu.memory_space<vmem>>, vector<1x1x8x128xf32>
    %50 = vector.shape_cast %49 : vector<1x1x8x128xf32> to vector<8x128xf32>
    %51 = vector.shape_cast %48 : vector<8x128xf32> to vector<1x1x8x128xf32>
    tpu.vector_store %arg6[%c0_24, %c0_25, %c8_26, %c0_27], %51 {strides = array<i32>} : memref<1x1x40x128xf32, #tpu.memory_space<vmem>>, vector<1x1x8x128xf32>,
    %c0_28 = arith.constant 0 : index
    %c0_29 = arith.constant 0 : index
    %c16 = arith.constant 16 : index
    %c0_30 = arith.constant 0 : index
    %52 = vector.load %arg6[%c0_28, %c0_29, %c16, %c0_30] : memref<1x1x40x128xf32, #tpu.memory_space<vmem>>, vector<1x1x8x128xf32>
    %53 = vector.shape_cast %52 : vector<1x1x8x128xf32> to vector<8x128xf32>
    %54 = vector.shape_cast %33 : vector<32x128xf32> to vector<4x8x128xf32>
    %cst_31 = arith.constant dense<0.000000e+00> : vector<8x128xf32>
    %55 = vector.multi_reduction <add>, %54, %cst_31 [0] : vector<4x8x128xf32> to vector<8x128xf32>
    %56 = arith.addf %53, %55 : vector<8x128xf32>
    %c0_32 = arith.constant 0 : index
    %c0_33 = arith.constant 0 : index
    %c16_34 = arith.constant 16 : index
    %c0_35 = arith.constant 0 : index
    %57 = vector.load %arg6[%c0_32, %c0_33, %c16_34, %c0_35] : memref<1x1x40x128xf32, #tpu.memory_space<vmem>>, vector<1x1x8x128xf32>
    %58 = vector.shape_cast %57 : vector<1x1x8x128xf32> to vector<8x128xf32>
    %59 = vector.shape_cast %56 : vector<8x128xf32> to vector<1x1x8x128xf32>
    tpu.vector_store %arg6[%c0_32, %c0_33, %c16_34, %c0_35], %59 {strides = array<i32>} : memref<1x1x40x128xf32, #tpu.memory_space<vmem>>, vector<1x1x8x128xf32>,
    %c0_36 = arith.constant 0 : index
    %c0_37 = arith.constant 0 : index
    %c24 = arith.constant 24 : index
    %c0_38 = arith.constant 0 : index
    %60 = vector.load %arg6[%c0_36, %c0_37, %c24, %c0_38] : memref<1x1x40x128xf32, #tpu.memory_space<vmem>>, vector<1x1x8x128xf32>
    %61 = vector.shape_cast %60 : vector<1x1x8x128xf32> to vector<8x128xf32>
    %62 = vector.shape_cast %34 : vector<32x128xf32> to vector<4x8x128xf32>
    %cst_39 = arith.constant dense<0.000000e+00> : vector<8x128xf32>
    %63 = vector.multi_reduction <add>, %62, %cst_39 [0] : vector<4x8x128xf32> to vector<8x128xf32>
    %64 = arith.addf %61, %63 : vector<8x128xf32>
    %c0_40 = arith.constant 0 : index
    %c0_41 = arith.constant 0 : index
    %c24_42 = arith.constant 24 : index
    %c0_43 = arith.constant 0 : index
    %65 = vector.load %arg6[%c0_40, %c0_41, %c24_42, %c0_43] : memref<1x1x40x128xf32, #tpu.memory_space<vmem>>, vector<1x1x8x128xf32>
    %66 = vector.shape_cast %65 : vector<1x1x8x128xf32> to vector<8x128xf32>
    %67 = vector.shape_cast %64 : vector<8x128xf32> to vector<1x1x8x128xf32>
    tpu.vector_store %arg6[%c0_40, %c0_41, %c24_42, %c0_43], %67 {strides = array<i32>} : memref<1x1x40x128xf32, #tpu.memory_space<vmem>>, vector<1x1x8x128xf32>,
    %c0_44 = arith.constant 0 : index
    %c0_45 = arith.constant 0 : index
    %c32 = arith.constant 32 : index
    %c0_46 = arith.constant 0 : index
    %68 = vector.load %arg6[%c0_44, %c0_45, %c32, %c0_46] : memref<1x1x40x128xf32, #tpu.memory_space<vmem>>, vector<1x1x8x128xf32>
    %69 = vector.shape_cast %68 : vector<1x1x8x128xf32> to vector<8x128xf32>
    %70 = vector.shape_cast %35 : vector<32x128xf32> to vector<4x8x128xf32>
    %cst_47 = arith.constant dense<0.000000e+00> : vector<8x128xf32>
    %71 = vector.multi_reduction <add>, %70, %cst_47 [0] : vector<4x8x128xf32> to vector<8x128xf32>
    %72 = arith.addf %69, %71 : vector<8x128xf32>
    %c0_48 = arith.constant 0 : index
    %c0_49 = arith.constant 0 : index
    %c32_50 = arith.constant 32 : index
    %c0_51 = arith.constant 0 : index
    %73 = vector.load %arg6[%c0_48, %c0_49, %c32_50, %c0_51] : memref<1x1x40x128xf32, #tpu.memory_space<vmem>>, vector<1x1x8x128xf32>
    %74 = vector.shape_cast %73 : vector<1x1x8x128xf32> to vector<8x128xf32>
    %75 = vector.shape_cast %72 : vector<8x128xf32> to vector<1x1x8x128xf32>
    tpu.vector_store %arg6[%c0_48, %c0_49, %c32_50, %c0_51], %75 {strides = array<i32>} : memref<1x1x40x128xf32, #tpu.memory_space<vmem>>, vector<1x1x8x128xf32>,
    %c1_i32_52 = arith.constant 1 : i32
    return
  }
  func.func @transform_0(%arg0: i32, %arg1: i32, %arg2: i32) -> (i32, i32, i32) {
    %c1_i32 = arith.constant 1 : i32
    %0 = arith.muli %arg0, %c1_i32 : i32
    %1 = arith.addi %0, %arg2 : i32
    %c0_i32 = arith.constant 0 : i32
    %c0_i32_0 = arith.constant 0 : i32
    return %arg1, %1, %c0_i32 : i32, i32, i32
  }
  func.func @transform_1(%arg0: i32, %arg1: i32, %arg2: i32) -> (i32, i32, i32) {
    %c1_i32 = arith.constant 1 : i32
    %0 = arith.muli %arg0, %c1_i32 : i32
    %1 = arith.addi %0, %arg2 : i32
    %c0_i32 = arith.constant 0 : i32
    %c0_i32_0 = arith.constant 0 : i32
    return %arg1, %1, %c0_i32 : i32, i32, i32
  }
  func.func @transform_2(%arg0: i32, %arg1: i32, %arg2: i32) -> (i32, i32, i32) {
    %c1_i32 = arith.constant 1 : i32
    %0 = arith.muli %arg0, %c1_i32 : i32
    %1 = arith.addi %0, %arg2 : i32
    %c0_i32 = arith.constant 0 : i32
    %c0_i32_0 = arith.constant 0 : i32
    return %arg1, %1, %c0_i32 : i32, i32, i32
  }
  func.func @transform_3(%arg0: i32, %arg1: i32, %arg2: i32) -> (i32, i32, i32, i32) {
    %c0_i32 = arith.constant 0 : i32
    %c0_i32_0 = arith.constant 0 : i32
    %c0_i32_1 = arith.constant 0 : i32
    return %arg0, %arg1, %c0_i32, %c0_i32_0 : i32, i32, i32, i32
  }
}

</mosaic_0001>

<bundles_post_ra>
// kernel: tpu_custom_call.1
= control target key start
LH: loop header
LB: loop body
LE: loop exit
PB: predicated region body
PF: predicated region fallthrough
CT: control target
= control target key end

     0   :  { %s1179_s0 = inlined_call_operand.hbm [shape: f32[2,32,128], index: 0, kind: input, shape index: {}]   ;;  %s1180_s1 = inlined_call_operand.hbm [shape: f32[2,32,128], index: 1, kind: input, shape index: {}]   ;;  %s1181_s2 = inlined_call_operand.hbm [shape: f32[2,32,128], index: 2, kind: input, shape index: {}]   ;;  %s1182_s3 = inlined_call_operand.hbm [shape: f32[1,2,40,128], index: 3, kind: output, shape index: {}]  }
   0x1   :  { %1192 = sst [smem:[#allocation15_spill]] %s1180_s1 }
   0x2   :  { %8 = vsyncpa [#allocation3], 0 }
   0x3   :  { %10 = vsyncpa [#allocation3 + $0x1], 0 }
   0x4   :  { %11 = vsyncpa [#allocation6], 0 }
   0x5   :  { %13 = vsyncpa [#allocation6 + $0x1], 0 }
   0x6   :  { %14 = vsyncpa [#allocation4], 0 }
   0x7   :  { %16 = vsyncpa [#allocation4 + $0x1], 0  ;;  %s900_s12 = smov 0   ;;  %s902_s13 = smov 0  }
   0x8   :  { %s904_s14 = smov 0   ;;  %s906_s15 = smov 0  }
   0x9   :  { %s908_s16 = smov 0   ;;  %s910_s17 = smov 0  }
   0xa LB: > { %1193 = sst [smem:[#allocation12_spill]] %s866_s16  ;;  %s931_s18 = sadd.s32 4294967295, %s870_s17   ;;  %s870_s17 = sphi %s910_s17, %s22_s17   ;;  %s866_s16 = sphi %s908_s16, %s1216_s16   ;;  %s862_s15 = sphi %s906_s15, %s1215_s15   ;;  %s858_s14 = sphi %s904_s14, %s1219_s14   ;;  %s854_s13 = sphi %s902_s13, %s1218_s13   ;;  %s850_s12 = sphi %s900_s12, %s1217_s12  }
   0xb   : > { %s585_s19 = sadd.s32 4294967294, %s870_s17   ;;  %s37_s20 = sadd.s32 1, %s866_s16 }
   0xc   : > { %s52_s21 = sadd.s32 1, %s858_s14  ;;  %p39_p0 = scmp.ge.s32.totalorder %s37_s20, 2 }
   0xd   : > { %p59_p1 = scmp.ne.s32.totalorder %s858_s14, %s854_s13  ;;  %p60_p2 = scmp.eq.s32.totalorder %s870_s17, 0 }
   0xe   : > { %p65_p3 = scmp.ne.s32.totalorder %s854_s13, %s850_s12  ;;  %s1221_s20 = smov (%p39_p0, %s37_s20), 0 }
   0xf   : > { %1194 = sst [smem:[#allocation13_spill]] %s1221_s20  ;;  %p943_p4 = por %p60_p2, %p59_p1 }
  0x10   : > { %p66_p5 = scmp.eq.s32.totalorder %s931_s18, 0  ;;  %s47_s23 = ssub.s32 %s866_s16, %s1221_s20 }
  0x11   : > { %p151_p6 = scmp.eq.s32.totalorder %s931_s18, 1  ;;  %p50_p7 = scmp.eq.s32.totalorder %s47_s23, 0 }
  0x12   : > { %p951_p8 = por %p66_p5, %p65_p3  ;;  %p157_p10 = scmp.eq.s32.totalorder %s585_s19, 1 }
  0x13   : > { %p955_p9 = por %p151_p6, %p59_p1  ;;  %p635_p13 = scmp.lt.s32.totalorder %s870_s17, 2 }
  0x14   : > { %s1196_s24 = scalar_select %p951_p8, 1, 0 }
  0x15   : > { %s1197_s25 = scalar_select %p955_p9, 1, 0 }
  0x16   : > { %s960_s26 = scalar_select %p50_p7, %s858_s14, %s52_s21  }
  0x17   : > { %p962_p11 = por %p157_p10, %p65_p3  ;;  %s1185_s28 = sand.u32 1, %s858_s14  }
  0x18   : > { %1198 = sst [smem:[#allocation14_spill]] %s960_s26  ;;  %s971_s29 = sshll.u32 %s1185_s28, 5 }
  0x19   : > { %s1199_s27 = scalar_select %p962_p11, 1, 0 }
  0x1a   : > { %s974_s30 = sshll.u32 %s866_s16, 9  ;;  %p978_p0 = pnand %p635_p13, %p943_p4 }
  0x1b   : > { %s201_s5 = sand.u32 1, %s870_s17   ;;  %s1201_s1 = sld [smem:[#allocation15_spill]] }
  0x1c   : > { %s205_s9 = scalar_lea.vmem [#allocation5], %s971_s29  ;;  %s994_s11 = scalar_lea.sflag [#allocation6], %s201_s5 }
  0x1d   : > { %s215_s10 = sshll.u32 %s205_s9, 4  ;;  %p1000_p4 = pneg %p978_p0  ;;  %s991_s10 = int_to_ptr.vmem [resolvable:$true] %s215_s10 }
  0x21   : > { %s987_s8 = scalar_lea.hbm %s1201_s1, %s974_s30  ;;  %s699_s6 = scalar_lea.hbm %s1201_s1, 1024 }
  0x22   : > { %s694_s19 = scalar_lea.hbm %s987_s8, 512  ;;  %p700_p7 = scmp.lt.u32.totalorder %s987_s8, %s1201_s1 }
  0x23   : > { %p695_p3 = scmp.ne.s32.totalorder %s987_s8, %s694_s19  ;;  %p701_p10 = scmp.lt.u32.totalorder %s699_s6, %s694_s19 }
  0x24   : > { %p703_p12 = scmp.lt.u32.totalorder %s694_s19, %s987_s8 }
  0x25   : > { %p697_p5 = pnand %p1000_p4, %p695_p3  ;;  %p702_p13 = por %p701_p10, %p700_p7 }
  0x27   : > { %p698_p6 = pneg %p697_p5  ;;  %p704_p1 = por %p703_p12, %p702_p13 }
  0x29   : > { %p705_p2 = pnand %p704_p1, %p698_p6 }
  0x2b   : > { %708 = shalt.err (!%p705_p2)
}
  0x2c   : > { %s709_s5 = scalar_lea.vmem %s991_s10, 512  ;;  %s872_s22 = smov [#allocation5]  }
  0x2d   : > { %p710_p3 = scmp.ne.s32.totalorder %s991_s10, %s709_s5  ;;  %s714_s23 = sshll.u32 %s872_s22, 4  ;;  %s715_s23 = int_to_ptr.vmem [resolvable:$false] %s714_s23 }
  0x2e   : > { %s716_s7 = scalar_lea.vmem %s715_s23, 1024  ;;  %p717_p9 = scmp.lt.s32.totalorder %s991_s10, %s715_s23 }
  0x2f   : > { %p712_p5 = pnand %p710_p3, %p1000_p4  ;;  %p718_p8 = scmp.lt.s32.totalorder %s716_s7, %s709_s5 }
  0x31   : > { %p713_p11 = pneg %p712_p5  ;;  %p719_p7 = por %p718_p8, %p717_p9 }
  0x33   : > { %p720_p10 = pnand %p719_p7, %p713_p11 }
  0x35   : > { %723 = shalt.err (!%p720_p10)
}
  0x36   : > { %s1186_s19 = smov 128   ;;  %s1188_s6 = smov 8  }
  0x37   : > { %627 = dma.hbm_to_vmem [thread:$0]  (!%p978_p0), %s987_s8, 512, %s991_s10, %s994_s11, %s1186_s19, %s1186_s19, %s1188_s6  }
  0x38   : > { %p1203_p8 = scmp.lt.s32.totalorder %s870_s17, 3  ;;  %p1204_p9 = scmp.ge.s32.totalorder %s870_s17, 1 }
  0x39   : > { %s1039_s23 = scalar_lea.hbm %s1179_s0, %s974_s30  ;;  %s181_s7 = scalar_lea.vmem [#allocation2], %s971_s29 }
  0x3a   : > { %p1031_p11 = pnand %p1204_p9, %p1203_p8  ;;  %s191_s28 = sshll.u32 %s181_s7, 4  ;;  %s1042_s28 = int_to_ptr.vmem [resolvable:$true] %s191_s28 }
  0x3b   : > { %s1048_s19 = scalar_lea.hbm %s1181_s2, %s974_s30  ;;  %s1206_s6 = sand.u32 1, %s858_s14  }
  0x3c   : > { %s1205_s9 = scalar_select %p1031_p11, 1, 0 }
  0x3d   : > { %s1052_s1 = scalar_lea.sflag [#allocation3], %s1206_s6  ;;  %s724_s20 = scalar_lea.hbm %s1039_s23, 512 }
  0x3e   : > { %p725_p12 = scmp.ne.s32.totalorder %s1039_s23, %s724_s20  ;;  %s729_s16 = scalar_lea.hbm %s1179_s0, 1024 }
  0x3f   : > { %p730_p6 = scmp.lt.u32.totalorder %s1039_s23, %s1179_s0  ;;  %p731_p13 = scmp.lt.u32.totalorder %s729_s16, %s724_s20 }
  0x40   : > { %p727_p1 = pnand %p725_p12, %p1000_p4  ;;  %p733_p5 = scmp.lt.u32.totalorder %s724_s20, %s1039_s23 }
  0x41   : > { %p732_p3 = por %p731_p13, %p730_p6 }
  0x42   : > { %p728_p2 = pneg %p727_p1 }
  0x43   : > { %p734_p7 = por %p733_p5, %p732_p3 }
  0x45   : > { %p735_p10 = pnand %p734_p7, %p728_p2 }
  0x47   : > { %738 = shalt.err (!%p735_p10)
}
  0x48   : > { %s739_s30 = scalar_lea.vmem %s1042_s28, 512  ;;  %s875_s6 = smov [#allocation2]  }
  0x49   : > { %p740_p8 = scmp.ne.s32.totalorder %s1042_s28, %s739_s30  ;;  %s744_s8 = sshll.u32 %s875_s6, 4  ;;  %s745_s8 = int_to_ptr.vmem [resolvable:$false] %s744_s8 }
  0x4a   : > { %s746_s26 = scalar_lea.vmem %s745_s8, 1024  ;;  %p747_p1 = scmp.lt.s32.totalorder %s1042_s28, %s745_s8 }
  0x4b   : > { %p742_p9 = pnand %p740_p8, %p1000_p4  ;;  %p748_p11 = scmp.lt.s32.totalorder %s746_s26, %s739_s30 }
  0x4d   : > { %p743_p12 = pneg %p742_p9  ;;  %p749_p6 = por %p748_p11, %p747_p1 }
  0x4f   : > { %p750_p13 = pnand %p749_p6, %p743_p12 }
  0x51   : > { %753 = shalt.err (!%p750_p13)
}
  0x52   : > { %s1207_s16 = smov 8   ;;  %s1208_s20 = smov 128  }
  0x53   : > { %624 = dma.hbm_to_vmem [thread:$0]  (!%p978_p0), %s1039_s23, 512, %s1042_s28, %s1052_s1, %s1208_s20, %s1208_s20, %s1207_s16  }
  0x54   : > { %s229_s10 = scalar_lea.vmem [#allocation7], %s971_s29  ;;  %s754_s22 = scalar_lea.hbm %s1048_s19, 512 }
  0x55   : > { %s239_s5 = sshll.u32 %s229_s10, 4  ;;  %p755_p11 = scmp.ne.s32.totalorder %s1048_s19, %s754_s22  ;;  %s1080_s5 = int_to_ptr.vmem [resolvable:$true] %s239_s5 }
  0x56   : > { %s759_s6 = scalar_lea.hbm %s1181_s2, 1024  ;;  %p760_p5 = scmp.lt.u32.totalorder %s1048_s19, %s1181_s2 }
  0x57   : > { %p757_p2 = pnand %p755_p11, %p1000_p4  ;;  %p761_p7 = scmp.lt.u32.totalorder %s759_s6, %s754_s22 }
  0x58   : > { %p763_p8 = scmp.lt.u32.totalorder %s754_s22, %s1048_s19 }
  0x59   : > { %p758_p3 = pneg %p757_p2  ;;  %p762_p10 = por %p761_p7, %p760_p5 }
  0x5b   : > { %p764_p9 = por %p763_p8, %p762_p10 }
  0x5d   : > { %p765_p12 = pnand %p764_p9, %p758_p3 }
  0x5f   : > { %768 = shalt.err (!%p765_p12)
}
  0x60   : > { %s769_s1 = scalar_lea.vmem %s1080_s5, 512  ;;  %s876_s28 = smov [#allocation7]  }
  0x61   : > { %p770_p1 = scmp.ne.s32.totalorder %s1080_s5, %s769_s1  ;;  %s774_s29 = sshll.u32 %s876_s28, 4  ;;  %s775_s29 = int_to_ptr.vmem [resolvable:$false] %s774_s29 }
  0x62   : > { %s776_s23 = scalar_lea.vmem %s775_s29, 1024  ;;  %p777_p11 = scmp.lt.s32.totalorder %s1080_s5, %s775_s29 }
  0x63   : > { %p772_p6 = pnand %p770_p1, %p1000_p4  ;;  %p778_p2 = scmp.lt.s32.totalorder %s776_s23, %s769_s1 }
  0x65   : > { %p773_p13 = pneg %p772_p6  ;;  %p779_p5 = por %p778_p2, %p777_p11 }
  0x67   : > { %p780_p7 = pnand %p779_p5, %p773_p13 }
  0x69   : > { %783 = shalt.err (!%p780_p7)
}
  0x6a   : > { %630 = dma.hbm_to_vmem [thread:$0]  (!%p978_p0), %s1048_s19, 512, %s1080_s5, %s994_s11, %s1208_s20, %s1208_s20, %s1207_s16  }
  0x6b   : > { %p1209_p4 = scmp.ne.s32.totalorder %s1205_s9, 0 }
  0x6c   : > { %s1110_s21 = sand.u32 (!%p1209_p4), 1, %s854_s13   ;;  %p1210_p3 = scmp.ne.s32.totalorder (!%p1209_p4), %s1196_s24, 0 }
  0x6d   : > { %251 = sbr.rel (%p1209_p4) target bundleno = 166 (0xa6), region = 32  ;;  %s598_s10 = sshll.u32 (!%p1209_p4), %s1110_s21, 5 }
  0x6e   : > { %s254_s22 = scalar_lea.sflag (!%p1209_p4), [#allocation3], %s1110_s21  ;;  %s257_s7 = scalar_lea.vmem (!%p1209_p4), [#allocation2], %s598_s10 }
  0x74   : > { %837 = dma.done.wait (%p1210_p3), %s254_s22, 512  }
  0x75   : > { %839 = vsyncadd (%p1210_p3), %s254_s22, 4294966784  ;;  %s262_s4 = sand.u32 1, %s931_s18   ;;  %s266_s19 = scalar_lea.vmem [#allocation5], %s598_s10 }
  0x76   : > { %s263_s11 = scalar_lea.sflag [#allocation6], %s262_s4 }
  0x77   : > { %841 = dma.done.wait (%p1210_p3), %s263_s11, 1024  }
  0x78   : > { %843 = vsyncadd (%p1210_p3), %s263_s11, 4294966272  ;;  %s611_s9 = smul.u32 40, %s1110_s21  ;;  %v324_v0 = vld [vmem:[%s257_s7] sm:$0xff]  ;;  %s275_s16 = scalar_lea.vmem [#allocation7], %s598_s10 }
  0x79   : > { %v352_v1 = vld [vmem:[%s266_s19] sm:$0xff]  ;;  %v601_v3 = vmul.f32 -1.442695, %v324_v0  ;;  %s612_s18 = smul.u32 640, %s862_s15  ;;  %s427_s8 = scalar_lea.sflag [#allocation4], %s1110_s21 }
  0x7a   : > { %v356_v2 = vld [vmem:[%s275_s16] sm:$0xff]  ;;  %s307_s20 = scalar_lea.vmem [#allocation8], %s611_s9  ;;  %p1211_p10 = scmp.ne.s32.totalorder %s1197_s25, 0 }
  0x7b   : > { %690 = vpow2.f32 %v601_v3  ;;  %407 = vst [vmem:[%s307_s20 + $0x8] sm:$0xff] %v352_v1  ;;  %413 = vst [vmem:[%s307_s20 + $0x10] sm:$0xff] %v356_v2  ;;  %s442_s24 = sshll.u32 %s307_s20, 4  ;;  %s1128_s6 = scalar_lea.hbm %s1182_s3, %s612_s18  ;;  %s1130_s24 = int_to_ptr.vmem [resolvable:$true] %s442_s24 }
  0x7c   : > { %s784_s26 = scalar_lea.vmem %s1130_s24, 640  ;;  %s877_s15 = smov [#allocation8]  }
  0x7d   : > { %p785_p0 = scmp.ne.s32.totalorder %s1130_s24, %s784_s26  ;;  %s788_s1 = sshll.u32 %s877_s15, 4  ;;  %s789_s1 = int_to_ptr.vmem [resolvable:$false] %s788_s1 }
  0x7e   : > { %s790_s28 = scalar_lea.vmem %s789_s1, 1280  ;;  %p791_p12 = scmp.lt.s32.totalorder %s1130_s24, %s789_s1 }
  0x7f   : > { %p786_p8 = pnand %p785_p0, %p1211_p10  ;;  %p792_p1 = scmp.lt.s32.totalorder %s790_s28, %s784_s26 }
  0x81   : > { %p787_p9 = pneg %p786_p8  ;;  %p793_p6 = por %p792_p1, %p791_p12 }
  0x83   : > { %p794_p13 = pnand %p793_p6, %p787_p9 }
  0x85   : > { %v691_v4 = vpop.eup %690 }
  0x86   : > { %v340_v5 = vadd.f32 1.0, %v691_v4 }
  0x88   : > { %692 = vrcp.f32 %v340_v5 }
  0x92   : > { %v693_v6 = vpop.eup %692 }
  0x93   : > { %v388_v7 = vmul.f32 %v693_v6, %v352_v1  ;;  %401 = vst [vmem:[%s307_s20] sm:$0xff] %v693_v6 }
  0x95   : > { %v392_v8 = vmul.f32 %v388_v7, %v356_v2  ;;  %419 = vst [vmem:[%s307_s20 + $0x18] sm:$0xff] %v388_v7 }
  0x97   : > { %425 = vst [vmem:[%s307_s20 + $0x20] sm:$0xff] %v392_v8 }
  0x98   : > { %797 = shalt.err (!%p794_p13)
}
  0x99   : > { %s798_s29 = scalar_lea.hbm %s1128_s6, 640  ;;  %s802_s22 = scalar_lea.hbm %s1182_s3, 1280 }
  0x9a   : > { %p799_p11 = scmp.ne.s32.totalorder %s1128_s6, %s798_s29  ;;  %p803_p7 = scmp.lt.u32.totalorder %s1128_s6, %s1182_s3 }
  0x9b   : > { %p804_p4 = scmp.lt.u32.totalorder %s802_s22, %s798_s29  ;;  %p806_p0 = scmp.lt.u32.totalorder %s798_s29, %s1128_s6 }
  0x9c   : > { %p800_p2 = pnand %p799_p11, %p1211_p10 }
  0x9d   : > { %p805_p3 = por %p804_p4, %p803_p7 }
  0x9e   : > { %p801_p5 = pneg %p800_p2 }
  0x9f   : > { %p807_p8 = por %p806_p0, %p805_p3 }
  0xa1   : > { %p808_p9 = pnand %p807_p8, %p801_p5 }
  0xa3   : > { %811 = shalt.err (!%p808_p9)
}
  0xa4   : > { %s878_s11 = smov 128   ;;  %s879_s19 = smov 8  }
  0xa5   : > { %619 = dma.vmem_to_hbm [thread:$0]  (%p1211_p10), %s1130_s24, 640, %s1128_s6, %s427_s8, %s878_s11, %s878_s11, %s879_s19  }
  0xa6 PF: > { %s457_s9 = sand.u32 1, %s850_s12   ;;  %p1212_p12 = scmp.ne.s32.totalorder %s1199_s27, 0 }
  0xa7   : > { %p1213_p1 = scmp.ge.s32.totalorder %s870_s17, 2  ;;  %s458_s16 = scalar_lea.sflag [#allocation4], %s457_s9 }
  0xa9   : > { %p632_p6 = pnand %p1213_p1, %p1212_p12 }
  0xab   : > { %845 = dma.done.wait (!%p632_p6), %s458_s16, 640  }
  0xac   : > { %847 = vsyncadd (!%p632_p6), %s458_s16, 4294966656  ;;  %s22_s17 = sadd.s32 1, %s870_s17   ;;  %s1214_s20 = sld [smem:[#allocation14_spill]] }
  0xad   : > { %p19_p13 = scmp.ge.s32.totalorder %s22_s17, 4   ;;  %s1215_s15 = sld [smem:[#allocation12_spill]] }
  0xae   : > { %s1216_s16 = sld [smem:[#allocation13_spill]]  ;;  %s1217_s12 = smov %s854_s13 }
  0xaf   : > { %s1218_s13 = smov %s858_s14  ;;  %21 = sbr.rel (!%p19_p13) target bundleno = 10 (0xa), region = 105 }
  0xb2   : > { %s1219_s14 = smov %s1214_s20 }
  0xb6   :  { %463 = vsyncpa [#allocation3], 1 }
  0xb7   :  { %465 = vsyncpa [#allocation3 + $0x1], 1 }
  0xb8   :  { %466 = vsyncpa [#allocation6], 1 }
  0xb9   :  { %468 = vsyncpa [#allocation6 + $0x1], 1 }
  0xba   :  { %469 = vsyncpa [#allocation4], 1 }
  0xbb   :  { %471 = vsyncpa [#allocation4 + $0x1], 1 }

</bundles_post_ra>
